<compile_context>
chip_gen: v5e
topology: v5e:2x2
jax: 0.10.0
libtpu: 0.0.40
codegen_flags: <defaults>
</compile_context>

<pallas_src>
import functools

import jax
import jax.numpy as jnp
from jax.experimental import pallas as pl
from jax.experimental.pallas import tpu as pltpu

_EPS = 1e-6          # F.pairwise_distance default eps (added to the difference)
_MAX_TILE_K = 4096   # above this, chunk the feature axis (inner "arbitrary" axis)
_TILE_K = 1024       # feature-chunk width when chunking (multiple of 128)


def _round_up(x, m):
    return ((x + m - 1) // m) * m


def _round_down(x, m):
    return (x // m) * m


def _vmem_capacity_bytes():
    try:
        return int(pltpu.get_tpu_info().vmem_capacity_bytes)
    except Exception:
        return 64 * 1024 * 1024  # conservative fallback (v7x per-TC VMEM)


def _pick_tiles(batch, feat, itemsize, tile_b=None, tile_k=None):
    """Bytes-based, generation-aware tile selection."""
    vmem_cap = _vmem_capacity_bytes()

    # Native sublane packing: 8 rows for 4-byte, 16 for 2-byte, 32 for 1-byte.
    sub = {4: 8, 2: 16, 1: 32}.get(itemsize, 8)

    if tile_k is None:
        tile_k = feat if feat <= _MAX_TILE_K else _TILE_K
    tile_k = min(tile_k, feat)
    assert tile_k == feat or tile_k % 128 == 0, "tile_k must be a multiple of 128"

    if tile_b is None:
        # Per-row VMEM estimate: 3 streams x 2 pipeline buffers (streamed dtype)
        # + ~5 tile-sized f32 intermediates (upcasts, diffs, squares).
        per_row = 3 * 2 * tile_k * itemsize + 5 * tile_k * 4
        budget = vmem_cap // 2                     # stay well under physical VMEM
        rows = max(sub, budget // per_row)
        # Guarantee >= 2 grid steps over batch when possible (v7x megacore).
        if batch > sub:
            rows = min(rows, _round_up(pl.cdiv(batch, 2), sub))
        if rows >= batch:
            tile_b = batch                         # full-extent block (always legal)
        else:
            tile_b = max(sub, _round_down(rows, sub))
    else:
        tile_b = min(tile_b, batch)
        if tile_b < batch:
            tile_b = max(sub, _round_down(tile_b, sub))

    vmem_limit = (vmem_cap * 3) // 4               # explicit scoped-VMEM limit
    return int(tile_b), int(tile_k), int(vmem_limit)


def _triplet_kernel(batch, feat, tile_b, tile_k, num_b_tiles, num_k_tiles,
                    margin_ref, a_ref, p_ref, n_ref, out_ref,
                    dp2_ref, dn2_ref):
    i = pl.program_id(0)   # batch tile   ("parallel")
    k = pl.program_id(1)   # feature chunk ("arbitrary", innermost)

    @pl.when(k == 0)
    def _init():
        dp2_ref[...] = jnp.zeros_like(dp2_ref)
        dn2_ref[...] = jnp.zeros_like(dn2_ref)

    # Upcast in-kernel: bf16/f16 stream at half the HBM bytes, math runs in f32.
    a = a_ref[...].astype(jnp.float32)
    p = p_ref[...].astype(jnp.float32)
    n = n_ref[...].astype(jnp.float32)

    # PyTorch F.pairwise_distance(eps=1e-6): eps is added to the difference.
    dpos = a - p + _EPS
    dneg = a - n + _EPS

    def _accumulate(mask_cols):
        dp_d, dn_d = dpos, dneg
        if mask_cols:  # ragged last feature chunk: zero the padded lanes
            col = k * tile_k + jax.lax.broadcasted_iota(jnp.int32, dpos.shape, 1)
            ok = col < feat
            dp_d = jnp.where(ok, dp_d, 0.0)
            dn_d = jnp.where(ok, dn_d, 0.0)
        dp2_ref[...] += jnp.sum(dp_d * dp_d, axis=-1, keepdims=True)
        dn2_ref[...] += jnp.sum(dn_d * dn_d, axis=-1, keepdims=True)

    ragged_k = (feat % tile_k) != 0           # static Python bool
    if ragged_k:
        @pl.when(k == num_k_tiles - 1)
        def _acc_masked():
            _accumulate(True)

        @pl.when(k != num_k_tiles - 1)
        def _acc_plain():
            _accumulate(False)
    else:
        _accumulate(False)

    def _finalize(mask_rows):
        dp = jnp.sqrt(dp2_ref[...])
        dn = jnp.sqrt(dn2_ref[...])
        losses = jnp.maximum(dp - dn + margin_ref[0, 0], 0.0)      # (tile_b, 1)
        if mask_rows:  # ragged last batch tile: drop padded rows
            row = i * tile_b + jax.lax.broadcasted_iota(jnp.int32, losses.shape, 0)
            losses = jnp.where(row < batch, losses, 0.0)
        tile_sum = jnp.sum(losses)
        out_ref[...] = jnp.broadcast_to(tile_sum, out_ref.shape).astype(out_ref.dtype)

    is_last_k = k == num_k_tiles - 1
    ragged_b = (batch % tile_b) != 0          # static Python bool
    if ragged_b:
        is_last_b = i == num_b_tiles - 1

        @pl.when(jnp.logical_and(is_last_k, is_last_b))
        def _fin_masked():
            _finalize(True)

        @pl.when(jnp.logical_and(is_last_k, jnp.logical_not(is_last_b)))
        def _fin_plain():
            _finalize(False)
    else:
        @pl.when(is_last_k)
        def _fin():
            _finalize(False)


def triplet_margin_loss(anchor, positive, negative, margin=1.0,
                        tile_b=None, tile_k=None):
    """Pallas TPU implementation of TripletMarginLoss.forward (reduction='mean')."""
    assert anchor.shape == positive.shape == negative.shape
    assert anchor.ndim == 2, "expected (batch, feature) inputs"

    batch, feat = anchor.shape
    itemsize = jnp.dtype(anchor.dtype).itemsize
    tb, tk, vmem_limit = _pick_tiles(batch, feat, itemsize, tile_b, tile_k)
    num_b = int(pl.cdiv(batch, tb))
    num_k = int(pl.cdiv(feat, tk))

    margin_arr = jnp.asarray(margin, dtype=jnp.float32).reshape(1, 1)
    kernel = functools.partial(_triplet_kernel, batch, feat, tb, tk, num_b, num_k)

    partial_sums = pl.pallas_call(
        kernel,
        out_shape=jax.ShapeDtypeStruct((num_b, 8, 128), jnp.float32),
        grid=(num_b, num_k),
        in_specs=[
            pl.BlockSpec(memory_space=pltpu.SMEM),            # margin (resident)
            pl.BlockSpec((tb, tk), lambda i, k: (i, k)),      # anchor tile
            pl.BlockSpec((tb, tk), lambda i, k: (i, k)),      # positive tile
            pl.BlockSpec((tb, tk), lambda i, k: (i, k)),      # negative tile
        ],
        out_specs=pl.BlockSpec((1, 8, 128), lambda i, k: (i, 0, 0)),
        scratch_shapes=[
            pltpu.VMEM((tb, 1), jnp.float32),                 # dp^2 accumulator
            pltpu.VMEM((tb, 1), jnp.float32),                 # dn^2 accumulator
        ],
        compiler_params=pltpu.CompilerParams(
            dimension_semantics=("parallel", "arbitrary"),
            vmem_limit_bytes=vmem_limit),
    )(margin_arr, anchor, positive, negative)

    # Tiny final reduction (one scalar per batch tile) + mean over TRUE batch.
    return jnp.sum(partial_sums[:, 0, 0]) / batch


def _reference(a, p, n, margin):
    dp = jnp.sqrt(jnp.sum((a - p + _EPS) ** 2, axis=-1))
    dn = jnp.sqrt(jnp.sum((a - n + _EPS) ** 2, axis=-1))
    return jnp.mean(jnp.maximum(dp - dn + margin, 0.0))


if __name__ == "__main__":
    key = jax.random.PRNGKey(0)
    k_a, k_p, k_n = jax.random.split(key, 3)

    # --- Test 1: f32, default tiling -> 2 batch tiles with a ragged last tile ---
    batch, feat = 20, 128
    anchor = jax.random.normal(k_a, (batch, feat), dtype=jnp.float32)
    positive = jax.random.normal(k_p, (batch, feat), dtype=jnp.float32)
    negative = jax.random.normal(k_n, (batch, feat), dtype=jnp.float32)

    loss = triplet_margin_loss(anchor, positive, negative, margin=1.0)
    jax.block_until_ready(loss)
    ref = _reference(anchor, positive, negative, 1.0)
    assert jnp.allclose(loss, ref, atol=1e-5, rtol=1e-5), (loss, ref)

    # --- Test 2: bf16 inputs streamed directly (no wrapper pre-cast) ---
    a16 = anchor[:16, :].astype(jnp.bfloat16)
    p16 = positive[:16, :].astype(jnp.bfloat16)
    n16 = negative[:16, :].astype(jnp.bfloat16)
    loss16 = triplet_margin_loss(a16, p16, n16, margin=0.5)
    jax.block_until_ready(loss16)
    ref16 = _reference(a16.astype(jnp.float32), p16.astype(jnp.float32),
                       n16.astype(jnp.float32), 0.5)
    assert jnp.allclose(loss16, ref16, atol=5e-3, rtol=5e-3), (loss16, ref16)

    # --- Test 3: feature-chunked path with ragged last chunk + ragged batch ---
    b3, f3 = 24, 320
    k3a, k3p, k3n = jax.random.split(jax.random.PRNGKey(0), 3)
    a3 = jax.random.normal(k3a, (b3, f3), dtype=jnp.float32)
    p3 = jax.random.normal(k3p, (b3, f3), dtype=jnp.float32)
    n3 = jax.random.normal(k3n, (b3, f3), dtype=jnp.float32)
    loss3 = triplet_margin_loss(a3, p3, n3, margin=1.0, tile_k=128)
    jax.block_until_ready(loss3)
    ref3 = _reference(a3, p3, n3, 1.0)
    assert jnp.allclose(loss3, ref3, atol=1e-5, rtol=1e-5), (loss3, ref3)

    print("KERNEL_OK")
</pallas_src>

<mosaic_0001>
module attributes {stable_mosaic.version = 11 : i64} {
  func.func @_triplet_kernel(%arg0: i32, %arg1: i32, %arg2: memref<1x1xf32, #tpu.memory_space<smem>>, %arg3: memref<16x128xf32, #tpu.memory_space<vmem>>, %arg4: memref<16x128xf32, #tpu.memory_space<vmem>>, %arg5: memref<16x128xf32, #tpu.memory_space<vmem>>, %arg6: memref<1x8x128xf32, #tpu.memory_space<vmem>>, %arg7: memref<16x1xf32, #tpu.memory_space<vmem>>, %arg8: memref<16x1xf32, #tpu.memory_space<vmem>>) attributes {dimension_semantics = [#tpu.dimension_semantics<parallel>, #tpu.dimension_semantics<arbitrary>], iteration_bounds = array<i64: 2, 1>, scalar_prefetch = 0 : i64, scratch_operands = 2 : i64, tpu.core_type = #tpu.core_type<tc>, window_params = [{transform_indices = @transform_0, window_bounds = array<i64: 1, 1>}, {transform_indices = @transform_1, window_bounds = array<i64: 16, 128>}, {transform_indices = @transform_2, window_bounds = array<i64: 16, 128>}, {transform_indices = @transform_3, window_bounds = array<i64: 16, 128>}, {transform_indices = @transform_4, window_bounds = array<i64: 1, 8, 128>}]} {
    %c0_i32 = arith.constant 0 : i32
    %0 = arith.cmpi eq, %arg1, %c0_i32 : i32
    %1 = arith.extui %0 : i1 to i32
    %c0_i32_0 = arith.constant 0 : i32
    %2 = arith.cmpi ne, %1, %c0_i32_0 : i32
    scf.if %2 {
      %cst_20 = arith.constant 0.000000e+00 : f32
      %33 = vector.broadcast %cst_20 : f32 to vector<16x1xf32>
      %c0_21 = arith.constant 0 : index
      %c0_22 = arith.constant 0 : index
      %34 = vector.load %arg7[%c0_21, %c0_22] : memref<16x1xf32, #tpu.memory_space<vmem>>, vector<16x1xf32>
      tpu.vector_store %arg7[%c0_21, %c0_22], %33 {strides = array<i32>} : memref<16x1xf32, #tpu.memory_space<vmem>>, vector<16x1xf32>,
      %cst_23 = arith.constant 0.000000e+00 : f32
      %35 = vector.broadcast %cst_23 : f32 to vector<16x1xf32>
      %c0_24 = arith.constant 0 : index
      %c0_25 = arith.constant 0 : index
      %36 = vector.load %arg8[%c0_24, %c0_25] : memref<16x1xf32, #tpu.memory_space<vmem>>, vector<16x1xf32>
      tpu.vector_store %arg8[%c0_24, %c0_25], %35 {strides = array<i32>} : memref<16x1xf32, #tpu.memory_space<vmem>>, vector<16x1xf32>,
    } else {
    }
    %c0 = arith.constant 0 : index
    %c0_1 = arith.constant 0 : index
    %3 = vector.load %arg3[%c0, %c0_1] : memref<16x128xf32, #tpu.memory_space<vmem>>, vector<16x128xf32>
    %c0_2 = arith.constant 0 : index
    %c0_3 = arith.constant 0 : index
    %4 = vector.load %arg4[%c0_2, %c0_3] : memref<16x128xf32, #tpu.memory_space<vmem>>, vector<16x128xf32>
    %c0_4 = arith.constant 0 : index
    %c0_5 = arith.constant 0 : index
    %5 = vector.load %arg5[%c0_4, %c0_5] : memref<16x128xf32, #tpu.memory_space<vmem>>, vector<16x128xf32>
    %6 = arith.subf %3, %4 : vector<16x128xf32>
    %cst = arith.constant 9.99999997E-7 : f32
    %7 = vector.broadcast %cst : f32 to vector<16x128xf32>
    %8 = arith.addf %6, %7 : vector<16x128xf32>
    %9 = arith.subf %3, %5 : vector<16x128xf32>
    %cst_6 = arith.constant 9.99999997E-7 : f32
    %10 = vector.broadcast %cst_6 : f32 to vector<16x128xf32>
    %11 = arith.addf %9, %10 : vector<16x128xf32>
    %c0_7 = arith.constant 0 : index
    %c0_8 = arith.constant 0 : index
    %12 = vector.load %arg7[%c0_7, %c0_8] : memref<16x1xf32, #tpu.memory_space<vmem>>, vector<16x1xf32>
    %13 = arith.mulf %8, %8 : vector<16x128xf32>
    %cst_9 = arith.constant dense<0.000000e+00> : vector<16xf32>
    %14 = vector.multi_reduction <add>, %13, %cst_9 [1] : vector<16x128xf32> to vector<16xf32>
    %15 = vector.shape_cast %14 : vector<16xf32> to vector<16x1xf32>
    %16 = arith.addf %12, %15 : vector<16x1xf32>
    %c0_10 = arith.constant 0 : index
    %c0_11 = arith.constant 0 : index
    %17 = vector.load %arg7[%c0_10, %c0_11] : memref<16x1xf32, #tpu.memory_space<vmem>>, vector<16x1xf32>
    tpu.vector_store %arg7[%c0_10, %c0_11], %16 {strides = array<i32>} : memref<16x1xf32, #tpu.memory_space<vmem>>, vector<16x1xf32>,
    %c0_12 = arith.constant 0 : index
    %c0_13 = arith.constant 0 : index
    %18 = vector.load %arg8[%c0_12, %c0_13] : memref<16x1xf32, #tpu.memory_space<vmem>>, vector<16x1xf32>
    %19 = arith.mulf %11, %11 : vector<16x128xf32>
    %cst_14 = arith.constant dense<0.000000e+00> : vector<16xf32>
    %20 = vector.multi_reduction <add>, %19, %cst_14 [1] : vector<16x128xf32> to vector<16xf32>
    %21 = vector.shape_cast %20 : vector<16xf32> to vector<16x1xf32>
    %22 = arith.addf %18, %21 : vector<16x1xf32>
    %c0_15 = arith.constant 0 : index
    %c0_16 = arith.constant 0 : index
    %23 = vector.load %arg8[%c0_15, %c0_16] : memref<16x1xf32, #tpu.memory_space<vmem>>, vector<16x1xf32>
    tpu.vector_store %arg8[%c0_15, %c0_16], %22 {strides = array<i32>} : memref<16x1xf32, #tpu.memory_space<vmem>>, vector<16x1xf32>,
    %c0_i32_17 = arith.constant 0 : i32
    %24 = arith.cmpi eq, %arg1, %c0_i32_17 : i32
    %c1_i32 = arith.constant 1 : i32
    %25 = arith.cmpi eq, %arg0, %c1_i32 : i32
    %26 = arith.andi %24, %25 : i1
    %27 = arith.extui %26 : i1 to i32
    %c0_i32_18 = arith.constant 0 : i32
    %28 = arith.cmpi ne, %27, %c0_i32_18 : i32
    scf.if %28 {
      %c0_20 = arith.constant 0 : index
      %c0_21 = arith.constant 0 : index
      %33 = vector.load %arg7[%c0_20, %c0_21] : memref<16x1xf32, #tpu.memory_space<vmem>>, vector<16x1xf32>
      %34 = math.sqrt %33 : vector<16x1xf32>
      %c0_22 = arith.constant 0 : index
      %c0_23 = arith.constant 0 : index
      %35 = vector.load %arg8[%c0_22, %c0_23] : memref<16x1xf32, #tpu.memory_space<vmem>>, vector<16x1xf32>
      %36 = math.sqrt %35 : vector<16x1xf32>
      %37 = arith.subf %34, %36 : vector<16x1xf32>
      %c0_24 = arith.constant 0 : index
      %c0_25 = arith.constant 0 : index
      %38 = memref.load %arg2[%c0_24, %c0_25] : memref<1x1xf32, #tpu.memory_space<smem>>
      %39 = vector.broadcast %38 : f32 to vector<16x1xf32>
      %40 = arith.addf %37, %39 : vector<16x1xf32>
      %cst_26 = arith.constant 0.000000e+00 : f32
      %41 = vector.broadcast %cst_26 : f32 to vector<16x1xf32>
      %42 = arith.maximumf %40, %41 : vector<16x1xf32>
      %c16_i32 = arith.constant 16 : i32
      %43 = arith.muli %arg0, %c16_i32 : i32
      %44 = tpu.iota {dimensions = array<i32: 0>} : vector<16x1xi32>
      %45 = vector.broadcast %43 : i32 to vector<16x1xi32>
      %46 = arith.addi %45, %44 : vector<16x1xi32>
      %c20_i32 = arith.constant 20 : i32
      %47 = vector.broadcast %c20_i32 : i32 to vector<16x1xi32>
      %48 = arith.cmpi slt, %46, %47 : vector<16x1xi32>
      %cst_27 = arith.constant 0.000000e+00 : f32
      %49 = vector.broadcast %cst_27 : f32 to vector<16x1xf32>
      %50 = arith.select %48, %42, %49 : vector<16x1xi1>, vector<16x1xf32>
      %51 = vector.shape_cast %50 : vector<16x1xf32> to vector<1x16x1xf32>
      %cst_28 = arith.constant dense<0.000000e+00> : vector<1xf32>
      %52 = vector.multi_reduction <add>, %51, %cst_28 [1, 2] : vector<1x16x1xf32> to vector<1xf32>
      %53 = vector.shape_cast %52 : vector<1xf32> to vector<1x1x1xf32>
      %54 = vector.extract %53[0, 0, 0] : f32 from vector<1x1x1xf32>
      %55 = vector.broadcast %54 : f32 to vector<1x8x128xf32>
      %c0_29 = arith.constant 0 : index
      %c0_30 = arith.constant 0 : index
      %c0_31 = arith.constant 0 : index
      %56 = vector.load %arg6[%c0_29, %c0_30, %c0_31] : memref<1x8x128xf32, #tpu.memory_space<vmem>>, vector<1x8x128xf32>
      tpu.vector_store %arg6[%c0_29, %c0_30, %c0_31], %55 {strides = array<i32>} : memref<1x8x128xf32, #tpu.memory_space<vmem>>, vector<1x8x128xf32>,
    } else {
    }
    %true = arith.constant true
    %29 = arith.xori %25, %true : i1
    %30 = arith.andi %24, %29 : i1
    %31 = arith.extui %30 : i1 to i32
    %c0_i32_19 = arith.constant 0 : i32
    %32 = arith.cmpi ne, %31, %c0_i32_19 : i32
    scf.if %32 {
      %c0_20 = arith.constant 0 : index
      %c0_21 = arith.constant 0 : index
      %33 = vector.load %arg7[%c0_20, %c0_21] : memref<16x1xf32, #tpu.memory_space<vmem>>, vector<16x1xf32>
      %34 = math.sqrt %33 : vector<16x1xf32>
      %c0_22 = arith.constant 0 : index
      %c0_23 = arith.constant 0 : index
      %35 = vector.load %arg8[%c0_22, %c0_23] : memref<16x1xf32, #tpu.memory_space<vmem>>, vector<16x1xf32>
      %36 = math.sqrt %35 : vector<16x1xf32>
      %37 = arith.subf %34, %36 : vector<16x1xf32>
      %c0_24 = arith.constant 0 : index
      %c0_25 = arith.constant 0 : index
      %38 = memref.load %arg2[%c0_24, %c0_25] : memref<1x1xf32, #tpu.memory_space<smem>>
      %39 = vector.broadcast %38 : f32 to vector<16x1xf32>
      %40 = arith.addf %37, %39 : vector<16x1xf32>
      %cst_26 = arith.constant 0.000000e+00 : f32
      %41 = vector.broadcast %cst_26 : f32 to vector<16x1xf32>
      %42 = arith.maximumf %40, %41 : vector<16x1xf32>
      %43 = vector.shape_cast %42 : vector<16x1xf32> to vector<1x16x1xf32>
      %cst_27 = arith.constant dense<0.000000e+00> : vector<1xf32>
      %44 = vector.multi_reduction <add>, %43, %cst_27 [1, 2] : vector<1x16x1xf32> to vector<1xf32>
      %45 = vector.shape_cast %44 : vector<1xf32> to vector<1x1x1xf32>
      %46 = vector.extract %45[0, 0, 0] : f32 from vector<1x1x1xf32>
      %47 = vector.broadcast %46 : f32 to vector<1x8x128xf32>
      %c0_28 = arith.constant 0 : index
      %c0_29 = arith.constant 0 : index
      %c0_30 = arith.constant 0 : index
      %48 = vector.load %arg6[%c0_28, %c0_29, %c0_30] : memref<1x8x128xf32, #tpu.memory_space<vmem>>, vector<1x8x128xf32>
      tpu.vector_store %arg6[%c0_28, %c0_29, %c0_30], %47 {strides = array<i32>} : memref<1x8x128xf32, #tpu.memory_space<vmem>>, vector<1x8x128xf32>,
    } else {
    }
    return
  }
  func.func @transform_0(%arg0: i32, %arg1: i32) -> (i32, i32) {
    %c0_i32 = arith.constant 0 : i32
    %c0_i32_0 = arith.constant 0 : i32
    %c0_i32_1 = arith.constant 0 : i32
    return %c0_i32, %c0_i32_0 : i32, i32
  }
  func.func @transform_1(%arg0: i32, %arg1: i32) -> (i32, i32) {
    %c0_i32 = arith.constant 0 : i32
    return %arg0, %arg1 : i32, i32
  }
  func.func @transform_2(%arg0: i32, %arg1: i32) -> (i32, i32) {
    %c0_i32 = arith.constant 0 : i32
    return %arg0, %arg1 : i32, i32
  }
  func.func @transform_3(%arg0: i32, %arg1: i32) -> (i32, i32) {
    %c0_i32 = arith.constant 0 : i32
    return %arg0, %arg1 : i32, i32
  }
  func.func @transform_4(%arg0: i32, %arg1: i32) -> (i32, i32, i32) {
    %c0_i32 = arith.constant 0 : i32
    %c0_i32_0 = arith.constant 0 : i32
    %c0_i32_1 = arith.constant 0 : i32
    return %arg0, %c0_i32, %c0_i32_0 : i32, i32, i32
  }
}

</mosaic_0001>

<bundles_post_ra>
// kernel: tpu_custom_call.1
= control target key start
LH: loop header
LB: loop body
LE: loop exit
PB: predicated region body
PF: predicated region fallthrough
CT: control target
= control target key end

     0   :  { %s1383_s0 = inlined_call_operand.<no memory space> [shape: f32[1,1], index: 0, kind: input, shape index: {}]   ;;  %s1384_s1 = inlined_call_operand.hbm [shape: f32[20,128], index: 1, kind: input, shape index: {}]   ;;  %s1385_s2 = inlined_call_operand.hbm [shape: f32[20,128], index: 2, kind: input, shape index: {}]   ;;  %s1386_s3 = inlined_call_operand.hbm [shape: f32[20,128], index: 3, kind: input, shape index: {}]   ;;  %s1387_s4 = inlined_call_operand.hbm [shape: f32[2,8,128], index: 4, kind: output, shape index: {}]  }
   0x1   :  { %9 = sst [smem:[#allocation4]] %s1383_s0 }
   0x2   :  { %10 = vsyncpa [#allocation6], 0 }
   0x3   :  { %12 = vsyncpa [#allocation6 + $0x1], 0 }
   0x4   :  { %13 = vsyncpa [#allocation9], 0 }
   0x5   :  { %15 = vsyncpa [#allocation9 + $0x1], 0 }
   0x6   :  { %16 = vsyncpa [#allocation7], 0 }
   0x7   :  { %18 = vsyncpa [#allocation7 + $0x1], 0  ;;  %s1087_s17 = smov 0   ;;  %s1089_s18 = smov 0  }
   0x8   :  { %s1091_s19 = smov 0   ;;  %s1093_s20 = smov 0  }
   0x9   :  { %s1095_s21 = smov 0   ;;  %s1097_s22 = smov 0  }
   0xa LB: > { %s1118_s0 = sadd.s32 4294967295, %s1047_s22   ;;  %s718_s23 = sadd.s32 4294967294, %s1047_s22   ;;  %s1047_s22 = sphi %s1097_s22, %s24_s22   ;;  %s1043_s21 = sphi %s1095_s21, %s1403_s21   ;;  %s1039_s20 = sphi %s1093_s20, %s1402_s20   ;;  %s1035_s19 = sphi %s1091_s19, %s1401_s19   ;;  %s1031_s18 = sphi %s1089_s18, %s1400_s18   ;;  %s1027_s17 = sphi %s1087_s17, %s1399_s17  }
   0xb   : > { %s36_s24 = sadd.s32 1, %s1043_s21  ;;  %s66_s25 = sadd.s32 1, %s1035_s19 }
   0xc   : > { %p38_p0 = scmp.ge.s32.totalorder %s36_s24, 2  ;;  %p73_p1 = scmp.ne.s32.totalorder %s1035_s19, %s1031_s18 }
   0xd   : > { %p74_p2 = scmp.eq.s32.totalorder %s1047_s22, 0  ;;  %p79_p3 = scmp.ne.s32.totalorder %s1031_s18, %s1027_s17 }
   0xe   : > { %s1405_s24 = smov (%p38_p0, %s36_s24), 0  ;;  %p80_p5 = scmp.eq.s32.totalorder %s1118_s0, 0 }
   0xf   : > { %p1130_p4 = por %p74_p2, %p73_p1  ;;  %s61_s27 = ssub.s32 %s1043_s21, %s1405_s24 }
  0x10   : > { %p159_p6 = scmp.eq.s32.totalorder %s1118_s0, 1  ;;  %p64_p7 = scmp.eq.s32.totalorder %s61_s27, 0 }
  0x11   : > { %p1138_p8 = por %p80_p5, %p79_p3  ;;  %p165_p10 = scmp.eq.s32.totalorder %s718_s23, 1 }
  0x12   : > { %p1142_p9 = por %p159_p6, %p73_p1  ;;  %p720_p12 = scmp.ge.s32.totalorder %s1047_s22, 2 }
  0x13   : > { %s1147_s30 = scalar_select %p64_p7, %s1035_s19, %s66_s25  }
  0x14   : > { %p1149_p11 = por %p165_p10, %p79_p3  ;;  %184 = sbr.rel (%p720_p12) target bundleno = 135 (0x87), region = 20 }
  0x19   : > { %187 = sbr.rel (!%p1130_p4) target bundleno = 62 (0x3e), region = 24  ;;  %s188_s6 = sand.u32 (%p1130_p4), 1, %s1035_s19  }
  0x1a   : > { %s722_s7 = sshll.u32 (%p1130_p4), %s1043_s21, 1  ;;  %s721_s8 = sshll.u32 (%p1130_p4), %s188_s6, 4 }
  0x1b   : > { %s194_s9 = ssub.s32 (%p1130_p4), 3, %s722_s7  ;;  %s1163_s13 = scalar_lea.sflag (%p1130_p4), [#allocation6], %s188_s6 }
  0x1c   : > { %p195_p13 = scmp.lt.s32.totalorder (%p1130_p4), %s194_s9, 2  ;;  %s192_s14 = scalar_lea.vmem (%p1130_p4), [#allocation5], %s721_s8 }
  0x1e   : > { %s1407_s9 = smov (!%p195_p13, %s194_s9), 2 }
  0x1f   : > { %s723_s10 = sshll.u32 %s1407_s9, 3 }
  0x20   : > { %s198_s11 = ssub.s32 16, %s723_s10 }
  0x21   : > { %s199_s12 = sshll.u32 %s198_s11, 4 }
  0x22   : > { %200 = vsyncadd %s1163_s13, %s199_s12  ;;  %p1166_p0 = scmp.ne.s32.totalorder %s723_s10, 0  ;;  %s754_s16 = sshll.u32 %s1043_s21, 4 }
  0x23   : > { %s204_s27 = scalar_lea.hbm %s1384_s1, %s754_s16  ;;  %s1174_s7 = sshll.u32 %s192_s14, 4  ;;  %s209_s7 = int_to_ptr.vmem [resolvable:$true] %s1174_s7 }
  0x24   : > { %s206_s6 = sshll.u32 %s204_s27, 4  ;;  %s1388_s8 = sshll.u32 %s1407_s9, 7  ;;  %s1177_s6 = int_to_ptr.hbm [resolvable:$true] %s206_s6 }
  0x25   : > { %s844_s11 = sshra.s32 %s1177_s6, 4  ;;  %s846_s10 = sshrl.u32 %s1388_s8, 4  ;;  %s845_s11 = int_to_ptr.hbm [resolvable:$true] %s844_s11 }
  0x26   : > { %s851_s12 = scalar_lea.hbm %s845_s11, %s846_s10  ;;  %s855_s14 = scalar_lea.hbm %s1384_s1, 24 }
  0x27   : > { %p852_p1 = scmp.ne.s32.totalorder %s845_s11, %s851_s12  ;;  %p857_p5 = scmp.lt.s32.totalorder %s855_s14, %s851_s12 }
  0x29   : > { %p853_p2 = pnand %p852_p1, %p1166_p0 }
  0x2b   : > { %p854_p3 = pneg %p853_p2 }
  0x2d   : > { %p859_p6 = pnand %p857_p5, %p854_p3 }
  0x2f   : > { %862 = shalt.err (!%p859_p6)
}
  0x30   : > { %s863_s25 = sshra.s32 %s209_s7, 4  ;;  %s1049_s11 = smov [#allocation5]   ;;  %s864_s25 = int_to_ptr.vmem [resolvable:$true] %s863_s25 }
  0x31   : > { %s870_s27 = scalar_lea.vmem %s864_s25, %s846_s10  ;;  %s874_s8 = scalar_lea.vmem %s1049_s11, 32 }
  0x32   : > { %p871_p7 = scmp.ne.s32.totalorder %s864_s25, %s870_s27  ;;  %p876_p1 = scmp.lt.s32.totalorder %s874_s8, %s870_s27 }
  0x34   : > { %p872_p10 = pnand %p871_p7, %p1166_p0 }
  0x36   : > { %p873_p13 = pneg %p872_p10 }
  0x38   : > { %p878_p2 = pnand %p876_p1, %p873_p13 }
  0x3a   : > { %881 = shalt.err (!%p878_p2)
}
  0x3b   : > { %s1050_s23 = smov 128   ;;  %s1051_s12 = smov 8  }
  0x3c   : > { %s1395_s16 = sshll.u32 %s1407_s9, 7 }
  0x3d   : > { %214 = dma.hbm_to_vmem [thread:$0]  (%p1166_p0), %s1177_s6, %s1395_s16, %s209_s7, %s1163_s13, %s1050_s23, %s1050_s23, %s1051_s12  }
  0x3e PF: > { %217 = sbr.rel (!%p1130_p4) target bundleno = 99 (0x63), region = 28  ;;  %s218_s8 = sand.u32 (%p1130_p4), 1, %s1047_s22  }
  0x3f   : > { %s220_s10 = sand.u32 (%p1130_p4), 1, %s1035_s19   ;;  %s729_s25 = sshll.u32 (%p1130_p4), %s1043_s21, 1 }
  0x40   : > { %s728_s14 = sshll.u32 (%p1130_p4), %s220_s10, 4  ;;  %s224_s27 = ssub.s32 (%p1130_p4), 3, %s729_s25 }
  0x41   : > { %p225_p3 = scmp.lt.s32.totalorder (%p1130_p4), %s224_s27, 2  ;;  %s1208_s13 = scalar_lea.sflag (%p1130_p4), [#allocation9], %s218_s8 }
  0x42   : > { %s222_s7 = scalar_lea.vmem (%p1130_p4), [#allocation8], %s728_s14 }
  0x43   : > { %s1409_s27 = smov (!%p225_p3, %s224_s27), 2 }
  0x44   : > { %s730_s15 = sshll.u32 %s1409_s27, 3 }
  0x45   : > { %s228_s11 = ssub.s32 16, %s730_s15 }
  0x46   : > { %s229_s9 = sshll.u32 %s228_s11, 4 }
  0x47   : > { %230 = vsyncadd %s1208_s13, %s229_s9  ;;  %p1211_p0 = scmp.ne.s32.totalorder %s730_s15, 0  ;;  %s755_s23 = sshll.u32 %s1043_s21, 4 }
  0x48   : > { %s234_s10 = scalar_lea.hbm %s1385_s2, %s755_s23  ;;  %s1219_s25 = sshll.u32 %s222_s7, 4  ;;  %s239_s25 = int_to_ptr.vmem [resolvable:$true] %s1219_s25 }
  0x49   : > { %s236_s8 = sshll.u32 %s234_s10, 4  ;;  %s1389_s14 = sshll.u32 %s1409_s27, 7  ;;  %s1222_s8 = int_to_ptr.hbm [resolvable:$true] %s236_s8 }
  0x4a   : > { %s883_s11 = sshra.s32 %s1222_s8, 4  ;;  %s885_s15 = sshrl.u32 %s1389_s14, 4  ;;  %s884_s11 = int_to_ptr.hbm [resolvable:$true] %s883_s11 }
  0x4b   : > { %s890_s9 = scalar_lea.hbm %s884_s11, %s885_s15  ;;  %s894_s7 = scalar_lea.hbm %s1385_s2, 24 }
  0x4c   : > { %p891_p5 = scmp.ne.s32.totalorder %s884_s11, %s890_s9  ;;  %p896_p10 = scmp.lt.s32.totalorder %s894_s7, %s890_s9 }
  0x4e   : > { %p892_p6 = pnand %p891_p5, %p1211_p0 }
  0x50   : > { %p893_p7 = pneg %p892_p6 }
  0x52   : > { %p898_p13 = pnand %p896_p10, %p893_p7 }
  0x54   : > { %901 = shalt.err (!%p898_p13)
}
  0x55   : > { %s902_s16 = sshra.s32 %s239_s25, 4  ;;  %s1052_s11 = smov [#allocation8]   ;;  %s903_s16 = int_to_ptr.vmem [resolvable:$true] %s902_s16 }
  0x56   : > { %s909_s10 = scalar_lea.vmem %s903_s16, %s885_s15  ;;  %s913_s14 = scalar_lea.vmem %s1052_s11, 32 }
  0x57   : > { %p910_p1 = scmp.ne.s32.totalorder %s903_s16, %s909_s10  ;;  %p915_p5 = scmp.lt.s32.totalorder %s913_s14, %s909_s10 }
  0x59   : > { %p911_p2 = pnand %p910_p1, %p1211_p0 }
  0x5b   : > { %p912_p3 = pneg %p911_p2 }
  0x5d   : > { %p917_p6 = pnand %p915_p5, %p912_p3 }
  0x5f   : > { %920 = shalt.err (!%p917_p6)
}
  0x60   : > { %s1053_s12 = smov 128   ;;  %s1054_s9 = smov 8  }
  0x61   : > { %s1397_s23 = sshll.u32 %s1409_s27, 7 }
  0x62   : > { %244 = dma.hbm_to_vmem [thread:$0]  (%p1211_p0), %s1222_s8, %s1397_s23, %s239_s25, %s1208_s13, %s1053_s12, %s1053_s12, %s1054_s9  }
  0x63 PF: > { %247 = sbr.rel (!%p1130_p4) target bundleno = 135 (0x87), region = 32  ;;  %s248_s14 = sand.u32 (%p1130_p4), 1, %s1047_s22  }
  0x64   : > { %s250_s15 = sand.u32 (%p1130_p4), 1, %s1035_s19   ;;  %s736_s16 = sshll.u32 (%p1130_p4), %s1043_s21, 1 }
  0x65   : > { %s735_s7 = sshll.u32 (%p1130_p4), %s250_s15, 4  ;;  %s254_s10 = ssub.s32 (%p1130_p4), 3, %s736_s16 }
  0x66   : > { %p255_p7 = scmp.lt.s32.totalorder (%p1130_p4), %s254_s10, 2  ;;  %s1253_s13 = scalar_lea.sflag (%p1130_p4), [#allocation9], %s248_s14 }
  0x67   : > { %s252_s26 = scalar_lea.vmem (%p1130_p4), [#allocation10], %s735_s7 }
  0x68   : > { %s1411_s10 = smov (!%p255_p7, %s254_s10), 2 }
  0x69   : > { %s737_s6 = sshll.u32 %s1411_s10, 3 }
  0x6a   : > { %s258_s11 = ssub.s32 16, %s737_s6 }
  0x6b   : > { %s259_s27 = sshll.u32 %s258_s11, 4 }
  0x6c   : > { %260 = vsyncadd %s1253_s13, %s259_s27  ;;  %p1256_p4 = scmp.ne.s32.totalorder %s737_s6, 0  ;;  %s756_s8 = sshll.u32 %s1043_s21, 4 }
  0x6d   : > { %s264_s23 = scalar_lea.hbm %s1386_s3, %s756_s8  ;;  %s1264_s15 = sshll.u32 %s252_s26, 4  ;;  %s269_s15 = int_to_ptr.vmem [resolvable:$true] %s1264_s15 }
  0x6e   : > { %s266_s14 = sshll.u32 %s264_s23, 4  ;;  %s741_s7 = sshll.u32 %s1411_s10, 7  ;;  %s1267_s14 = int_to_ptr.hbm [resolvable:$true] %s266_s14 }
  0x6f   : > { %s922_s16 = sshra.s32 %s1267_s14, 4  ;;  %s924_s6 = sshrl.u32 %s741_s7, 4  ;;  %s923_s16 = int_to_ptr.hbm [resolvable:$true] %s922_s16 }
  0x70   : > { %s929_s11 = scalar_lea.hbm %s923_s16, %s924_s6  ;;  %s933_s26 = scalar_lea.hbm %s1386_s3, 24 }
  0x71   : > { %p930_p0 = scmp.ne.s32.totalorder %s923_s16, %s929_s11  ;;  %p935_p1 = scmp.lt.s32.totalorder %s933_s26, %s929_s11 }
  0x73   : > { %p931_p10 = pnand %p930_p0, %p1256_p4 }
  0x75   : > { %p932_p13 = pneg %p931_p10 }
  0x77   : > { %p937_p2 = pnand %p935_p1, %p932_p13 }
  0x79   : > { %940 = shalt.err (!%p937_p2)
}
  0x7a   : > { %s941_s12 = sshra.s32 %s269_s15, 4  ;;  %s1055_s23 = smov [#allocation10]   ;;  %s942_s12 = int_to_ptr.vmem [resolvable:$true] %s941_s12 }
  0x7b   : > { %s948_s9 = scalar_lea.vmem %s942_s12, %s924_s6  ;;  %s952_s16 = scalar_lea.vmem %s1055_s23, 32 }
  0x7c   : > { %p949_p3 = scmp.ne.s32.totalorder %s942_s12, %s948_s9  ;;  %p954_p7 = scmp.lt.s32.totalorder %s952_s16, %s948_s9 }
  0x7e   : > { %p950_p5 = pnand %p949_p3, %p1256_p4 }
  0x80   : > { %p951_p6 = pneg %p950_p5 }
  0x82   : > { %p956_p0 = pnand %p954_p7, %p951_p6 }
  0x84   : > { %959 = shalt.err (!%p956_p0)
}
  0x85   : > { %s1056_s27 = smov 128   ;;  %s1057_s11 = smov 8  }
  0x86   : > { %274 = dma.hbm_to_vmem [thread:$0]  (%p1256_p4), %s1267_s14, %s741_s7, %s269_s15, %s1253_s13, %s1056_s27, %s1056_s27, %s1057_s11  }
  0x87 PF: > { %p742_p10 = scmp.ge.s32.totalorder %s1047_s22, 1  ;;  %p276_p13 = scmp.lt.s32.totalorder %s1047_s22, 3 }
  0x89   : > { %p277_p1 = pnand %p742_p10, %p276_p13 }
  0x8a   : > { %s1293_s6 = sand.u32 (!%p277_p1), 1, %s1031_s18  }
  0x8b   : > { %280 = sbr.rel (%p277_p1) target bundleno = 738 (0x2e2), region = 36  ;;  %s743_s8 = sshll.u32 (!%p277_p1), %s1293_s6, 4 }
  0x8c   : > { %s283_s26 = scalar_lea.sflag (!%p277_p1), [#allocation6], %s1293_s6  ;;  %s286_s25 = scalar_lea.vmem (!%p277_p1), [#allocation5], %s743_s8 }
  0x90   : > { %1014 = dma.done.wait (%p1138_p8), %s283_s26, 256  }
  0x91   : > { %1016 = vsyncadd (%p1138_p8), %s283_s26, 4294967040  ;;  %s292_s10 = sand.u32 1, %s1118_s0   ;;  %s296_s15 = scalar_lea.vmem [#allocation8], %s743_s8 }
  0x92   : > { %s293_s13 = scalar_lea.sflag [#allocation9], %s292_s10 }
  0x93   : > { %1018 = dma.done.wait (%p1138_p8), %s293_s13, 512  }
  0x94   : > { %1020 = vsyncadd (%p1138_p8), %s293_s13, 4294966784  ;;  %vm361_vm0 = vcmask 7168   ;;  %v1058_v0 = vmov 0.0   ;;  %v366_v1 = vld [vmem:[%s286_s25] sm:$0xff]  ;;  %s306_s0 = scalar_lea.vmem [#allocation10], %s743_s8  ;;  %v367_v6 = vld [vmem:[%s286_s25 + $0x8] sm:$0xff] }
  0x95   : > { %364 = vst.msk [vmem:[#allocation3] sm:$0xff] %vm361_vm0, %v1058_v0  ;;  %v370_v2 = vld [vmem:[%s306_s0] sm:$0xff]  ;;  %v371_v7 = vld [vmem:[%s306_s0 + $0x8] sm:$0xff]  ;;  %s746_s28 = sshll.u32 %s1293_s6, 3  ;;  %p405_p8 = scmp.eq.s32.totalorder %s1039_s20, 1 }
  0x96   : > { %362 = vst.msk [vmem:[#allocation2] sm:$0xff] %vm361_vm0, %v1058_v0  ;;  %v368_v3 = vld [vmem:[%s296_s15] sm:$0xff]  ;;  %v376_v4 = vsub.f32 %v366_v1, %v370_v2  ;;  %v369_v8 = vld [vmem:[%s296_s15 + $0x8] sm:$0xff]  ;;  %v377_v11 = vsub.f32 %v367_v6, %v371_v7  ;;  %s1316_s14 = scalar_lea.vmem [#allocation11], %s746_s28  ;;  %v471_v47 = vlaneseq (%p405_p8)  ;;  %s1320_s7 = sld [smem:[#allocation4]] (%p405_p8) }
  0x97   : > { %363 = vst.msk [vmem:[#allocation2 + $0x8] sm:$0xff] %vm361_vm0, %v1058_v0  ;;  %v372_v5 = vsub.f32 %v366_v1, %v368_v3  ;;  %v373_v12 = vsub.f32 %v367_v6, %v369_v8  ;;  %s748_s12 = sshll.u32 (%p405_p8), %s1039_s20, 4 }
  0x98   : > { %365 = vst.msk [vmem:[#allocation3 + $0x8] sm:$0xff] %vm361_vm0, %v1058_v0  ;;  %v378_v9 = vadd.f32 1e-06, %v376_v4  ;;  %v379_v15 = vadd.f32 1e-06, %v377_v11  ;;  %v472_v57 = vshrl.u32 (%p405_p8), %v471_v47, 7  ;;  %v474_v6 = vstv (%p405_p8), %s748_s12 }
  0x99   : > { %v374_v10 = vadd.f32 1e-06, %v372_v5  ;;  %v375_v16 = vadd.f32 1e-06, %v373_v12 }
  0x9a   : > { %v395_v13 = vmul.f32 %v378_v9, %v378_v9  ;;  %v396_v17 = vmul.f32 %v379_v15, %v379_v15  ;;  %v473_v5 = vadd.s32 (%p405_p8), 8, %v472_v57  ;;  %v475_v15 = vadd.s32 (%p405_p8), %v474_v6, %v472_v57 }
  0x9b   : > { %v382_v14 = vmul.f32 %v374_v10, %v374_v10  ;;  %v383_v18 = vmul.f32 %v375_v16, %v375_v16 }
  0x9c   : > { %397 = vadd.xlane.f32.xlu1 %v395_v13  ;;  %v393_v19 = vld [vmem:[#allocation3] sm:$0xff]  ;;  %vm477_vm9 = vcmp.lt.s32.totalorder (%p405_p8), %v475_v15, 20 }
  0x9d   : > { %384 = vadd.xlane.f32.xlu0 %v382_v14  ;;  %v380_v20 = vld [vmem:[#allocation2] sm:$0xff]  ;;  %v465_v14 = vstv (%p405_p8), %s1320_s7 }
  0x9e   : > { %v381_v26 = vld [vmem:[#allocation2 + $0x8] sm:$0xff] }
  0x9f   : > { %v394_v25 = vld [vmem:[#allocation3 + $0x8] sm:$0xff] }
  0xa4   : > { %399 = vadd.xlane.f32.xlu1 %v396_v17 }
  0xa5   : > { %386 = vadd.xlane.f32.xlu0 %v383_v18  ;;  %v476_v18 = vadd.s32 (%p405_p8), %v474_v6, %v473_v5 }
  0xa7   : > { %vm478_vm10 = vcmp.lt.s32.totalorder (%p405_p8), %v476_v18, 20 }
 0x10f   : > { %v398_v21 = vpop.xlane.xlu1 %397 }
 0x110   : > { %v385_v22 = vpop.xlane.xlu0 %384  ;;  %v401_v23 = vadd.f32 %v398_v21, %v393_v19 }
 0x111   : > { %v388_v24 = vadd.f32 %v385_v22, %v380_v20 }
 0x112   : > { %403 = vst.msk [vmem:[#allocation3] sm:$0xff] %vm361_vm0, %v401_v23 }
 0x113   : > { %391 = vst.msk [vmem:[#allocation2] sm:$0xff] %vm361_vm0, %v388_v24 }
 0x117   : > { %v400_v27 = vpop.xlane.xlu1 %399  ;;  %409 = sbr.rel (!%p405_p8) target bundleno = 504 (0x1f8), region = 56 }
 0x118   : > { %v387_v28 = vpop.xlane.xlu0 %386  ;;  %v402_v29 = vadd.f32 %v400_v27, %v394_v25 }
 0x119   : > { %v389_v30 = vadd.f32 %v387_v28, %v381_v26  ;;  %v436_v33 = vld [vmem:[#allocation3] sm:$0xff] (%p405_p8) }
 0x11a   : > { %404 = vst.msk [vmem:[#allocation3 + $0x8] sm:$0xff] %vm361_vm0, %v402_v29  ;;  %v410_v31 = vld [vmem:[#allocation2] sm:$0xff] (%p405_p8)  ;;  %vm445_vm5 = vcmp.eq.f32.partialorder (%p405_p8), %v436_v33, inf  ;;  %vm447_vm6 = vcmp.eq.f32.partialorder (%p405_p8), %v436_v33, 0.0  ;;  %v448_v63 = vand.u32 (%p405_p8), 2147483648, %v436_v33 }
 0x11b   : > { %392 = vst.msk [vmem:[#allocation2 + $0x8] sm:$0xff] %vm361_vm0, %v389_v30  ;;  %828 = vrsqrt.f32 (%p405_p8), %v410_v31  ;;  %vm419_vm1 = vcmp.eq.f32.partialorder (%p405_p8), %v410_v31, inf  ;;  %vm421_vm2 = vcmp.eq.f32.partialorder (%p405_p8), %v410_v31, 0.0  ;;  %v422_v52 = vand.u32 (%p405_p8), 2147483648, %v410_v31 }
 0x121   : > { %v437_v34 = vld [vmem:[#allocation3 + $0x8] sm:$0xff]  ;;  %v829_v35 = vpop.eup %828 }
 0x122   : > { %v411_v32 = vld [vmem:[#allocation2 + $0x8] sm:$0xff]  ;;  %v413_v37 = vmul.f32 %v829_v35, %v410_v31  ;;  %vm457_vm7 = vcmp.eq.f32.partialorder %v437_v34, inf  ;;  %v460_v2 = vand.u32 2147483648, %v437_v34  ;;  %vm459_vm8 = vcmp.eq.f32.partialorder %v437_v34, 0.0 }
 0x123   : > { %830 = vrsqrt.f32 %v411_v32  ;;  %vm431_vm3 = vcmp.eq.f32.partialorder %v411_v32, inf  ;;  %vm433_vm4 = vcmp.eq.f32.partialorder %v411_v32, 0.0  ;;  %v434_v59 = vand.u32 2147483648, %v411_v32 }
 0x124   : > { %832 = vrsqrt.f32 %v436_v33  ;;  %v414_v41 = vmul.f32 %v829_v35, %v413_v37 }
 0x125   : > { %834 = vrsqrt.f32 %v437_v34 }
 0x126   : > { %v415_v45 = vmul.f32 0.5, %v414_v41 }
 0x128   : > { %v416_v50 = vsub.f32 1.5, %v415_v45 }
 0x129   : > { %v831_v36 = vpop.eup %830 }
 0x12a   : > { %v833_v38 = vpop.eup %832  ;;  %v425_v39 = vmul.f32 %v831_v36, %v411_v32  ;;  %v417_v55 = vmul.f32 %v829_v35, %v416_v50 }
 0x12b   : > { %v835_v40 = vpop.eup %834  ;;  %v439_v42 = vmul.f32 %v833_v38, %v436_v33 }
 0x12c   : > { %v426_v43 = vmul.f32 %v831_v36, %v425_v39  ;;  %v451_v44 = vmul.f32 %v835_v40, %v437_v34  ;;  %v418_v61 = vmul.f32 %v417_v55, %v410_v31 }
 0x12d   : > { %v440_v46 = vmul.f32 %v833_v38, %v439_v42 }
 0x12e   : > { %v427_v48 = vmul.f32 0.5, %v426_v43  ;;  %v452_v49 = vmul.f32 %v835_v40, %v451_v44  ;;  %v420_v3 = vsel %vm419_vm1, %v410_v31, %v418_v61 }
 0x12f   : > { %v441_v51 = vmul.f32 0.5, %v440_v46  ;;  %v423_v7 = vsel %vm421_vm2, %v422_v52, %v420_v3 }
 0x130   : > { %v428_v53 = vsub.f32 1.5, %v427_v48  ;;  %v453_v54 = vmul.f32 0.5, %v452_v49 }
 0x131   : > { %v442_v56 = vsub.f32 1.5, %v441_v51 }
 0x132   : > { %v429_v58 = vmul.f32 %v831_v36, %v428_v53  ;;  %v454_v60 = vsub.f32 1.5, %v453_v54 }
 0x133   : > { %v443_v62 = vmul.f32 %v833_v38, %v442_v56 }
 0x134   : > { %v430_v0 = vmul.f32 %v429_v58, %v411_v32  ;;  %v455_v1 = vmul.f32 %v835_v40, %v454_v60 }
 0x135   : > { %v444_v4 = vmul.f32 %v443_v62, %v436_v33 }
 0x136   : > { %v432_v8 = vsel %vm431_vm3, %v411_v32, %v430_v0  ;;  %v456_v9 = vmul.f32 %v455_v1, %v437_v34 }
 0x137   : > { %v435_v10 = vsel %vm433_vm4, %v434_v59, %v432_v8  ;;  %v446_v11 = vsel %vm445_vm5, %v436_v33, %v444_v4 }
 0x138   : > { %v449_v12 = vsel %vm447_vm6, %v448_v63, %v446_v11  ;;  %v458_v13 = vsel %vm457_vm7, %v437_v34, %v456_v9 }
 0x139   : > { %v461_v16 = vsel %vm459_vm8, %v460_v2, %v458_v13  ;;  %v462_v17 = vsub.f32 %v423_v7, %v449_v12 }
 0x13a   : > { %v463_v19 = vsub.f32 %v435_v10, %v461_v16 }
 0x13b   : > { %v466_v20 = vadd.f32 %v465_v14, %v462_v17 }
 0x13c   : > { %v467_v21 = vadd.f32 %v465_v14, %v463_v19 }
 0x13d   : > { %v468_v22 = vmax.f32 %v466_v20, 0.0 }
 0x13e   : > { %v469_v23 = vmax.f32 %v467_v21, 0.0 }
 0x13f   : > { %v479_v24 = vsel %vm477_vm9, %v468_v22, 0.0 }
 0x140   : > { %v480_v25 = vsel %vm478_vm10, %v469_v23, 0.0  ;;  %v481_v26 = vsel %vm361_vm0, %v479_v24, 0.0 }
 0x141   : > { %v482_v27 = vsel %vm361_vm0, %v480_v25, 0.0 }
 0x142   : > { %v483_v28 = vadd.f32 %v482_v27, %v481_v26 }
 0x144   : > { %484 = vadd.xlane.f32.xlu0 %v483_v28 }
 0x1b7   : > { %v485_v29 = vpop.xlane.xlu0 %484 }
 0x1b8   : > { %v486_v30 = vrot.slane %v485_v29, 4 }
 0x1ba   : > { %v487_v31 = vadd.f32 %v486_v30, %v485_v29 }
 0x1bc   : > { %v488_v32 = vrot.slane %v487_v31, 2 }
 0x1be   : > { %v489_v33 = vadd.f32 %v488_v32, %v487_v31 }
 0x1c0   : > { %v490_v34 = vrot.slane %v489_v33, 1 }
 0x1c2   : > { %v491_v35 = vadd.f32 %v490_v34, %v489_v33 }
 0x1c4   : > { %759 = vpush %v491_v35 }
 0x1f5   : > { %s760_s9 = spop %759 }
 0x1f6   : > { %v493_v36 = vstv %s760_s9 }
 0x1f7   : > { %494 = vst [vmem:[%s1316_s14] sm:$0xff] %v493_v36 }
 0x1f8 PF: > { %p495_p4 = scmp.ne.s32.totalorder %s1039_s20, 1 }
 0x1f9   : > { %v500_v37 = vld [vmem:[#allocation2] sm:$0xff] (%p495_p4)  ;;  %v526_v39 = vld [vmem:[#allocation3] sm:$0xff] (%p495_p4)  ;;  %s1334_s23 = sld [smem:[#allocation4]] (%p495_p4) }
 0x1fa   : > { %499 = sbr.rel (!%p495_p4) target bundleno = 723 (0x2d3), region = 60  ;;  %836 = vrsqrt.f32 (%p495_p4), %v500_v37  ;;  %vm509_vm11 = vcmp.eq.f32.partialorder (%p495_p4), %v500_v37, inf  ;;  %vm511_vm12 = vcmp.eq.f32.partialorder (%p495_p4), %v500_v37, 0.0  ;;  %v512_v60 = vand.u32 (%p495_p4), 2147483648, %v500_v37 }
 0x1fb   : > { %vm535_vm15 = vcmp.eq.f32.partialorder (%p495_p4), %v526_v39, inf  ;;  %vm537_vm1 = vcmp.eq.f32.partialorder (%p495_p4), %v526_v39, 0.0  ;;  %v538_v4 = vand.u32 (%p495_p4), 2147483648, %v526_v39 }
 0x1fd   : > { %v527_v40 = vld [vmem:[#allocation3 + $0x8] sm:$0xff] (%p495_p4) }
 0x1fe   : > { %v501_v38 = vld [vmem:[#allocation2 + $0x8] sm:$0xff] (%p495_p4)  ;;  %vm547_vm2 = vcmp.eq.f32.partialorder (%p495_p4), %v527_v40, inf  ;;  %v550_v8 = vand.u32 (%p495_p4), 2147483648, %v527_v40  ;;  %vm549_vm3 = vcmp.eq.f32.partialorder (%p495_p4), %v527_v40, 0.0 }
 0x1ff   : > { %838 = vrsqrt.f32 %v501_v38  ;;  %vm521_vm13 = vcmp.eq.f32.partialorder %v501_v38, inf  ;;  %vm523_vm14 = vcmp.eq.f32.partialorder %v501_v38, 0.0  ;;  %v524_v1 = vand.u32 2147483648, %v501_v38 }
 0x200   : > { %840 = vrsqrt.f32 %v526_v39  ;;  %v837_v41 = vpop.eup %836  ;;  %v555_v16 = vstv %s1334_s23 }
 0x201   : > { %842 = vrsqrt.f32 %v527_v40  ;;  %v503_v43 = vmul.f32 %v837_v41, %v500_v37 }
 0x203   : > { %v504_v47 = vmul.f32 %v837_v41, %v503_v43 }
 0x205   : > { %v839_v42 = vpop.eup %838  ;;  %v505_v51 = vmul.f32 0.5, %v504_v47 }
 0x206   : > { %v841_v44 = vpop.eup %840  ;;  %v515_v45 = vmul.f32 %v839_v42, %v501_v38 }
 0x207   : > { %v843_v46 = vpop.eup %842  ;;  %v529_v48 = vmul.f32 %v841_v44, %v526_v39  ;;  %v506_v55 = vsub.f32 1.5, %v505_v51 }
 0x208   : > { %v516_v49 = vmul.f32 %v839_v42, %v515_v45  ;;  %v541_v50 = vmul.f32 %v843_v46, %v527_v40 }
 0x209   : > { %v530_v52 = vmul.f32 %v841_v44, %v529_v48  ;;  %v507_v59 = vmul.f32 %v837_v41, %v506_v55 }
 0x20a   : > { %v517_v53 = vmul.f32 0.5, %v516_v49  ;;  %v542_v54 = vmul.f32 %v843_v46, %v541_v50 }
 0x20b   : > { %v531_v56 = vmul.f32 0.5, %v530_v52  ;;  %v508_v0 = vmul.f32 %v507_v59, %v500_v37 }
 0x20c   : > { %v518_v57 = vsub.f32 1.5, %v517_v53  ;;  %v543_v58 = vmul.f32 0.5, %v542_v54 }
 0x20d   : > { %v532_v61 = vsub.f32 1.5, %v531_v56  ;;  %v510_v6 = vsel %vm509_vm11, %v500_v37, %v508_v0 }
 0x20e   : > { %v519_v62 = vmul.f32 %v839_v42, %v518_v57  ;;  %v544_v63 = vsub.f32 1.5, %v543_v58  ;;  %v513_v9 = vsel %vm511_vm12, %v512_v60, %v510_v6 }
 0x20f   : > { %v533_v2 = vmul.f32 %v841_v44, %v532_v61 }
 0x210   : > { %v520_v3 = vmul.f32 %v519_v62, %v501_v38  ;;  %v545_v5 = vmul.f32 %v843_v46, %v544_v63 }
 0x211   : > { %v534_v7 = vmul.f32 %v533_v2, %v526_v39 }
 0x212   : > { %v522_v10 = vsel %vm521_vm13, %v501_v38, %v520_v3  ;;  %v546_v11 = vmul.f32 %v545_v5, %v527_v40 }
 0x213   : > { %v525_v12 = vsel %vm523_vm14, %v524_v1, %v522_v10  ;;  %v536_v13 = vsel %vm535_vm15, %v526_v39, %v534_v7 }
 0x214   : > { %v539_v14 = vsel %vm537_vm1, %v538_v4, %v536_v13  ;;  %v548_v15 = vsel %vm547_vm2, %v527_v40, %v546_v11 }
 0x215   : > { %v551_v17 = vsel %vm549_vm3, %v550_v8, %v548_v15  ;;  %v552_v18 = vsub.f32 %v513_v9, %v539_v14 }
 0x216   : > { %v553_v19 = vsub.f32 %v525_v12, %v551_v17 }
 0x217   : > { %v556_v20 = vadd.f32 %v555_v16, %v552_v18 }
 0x218   : > { %v557_v21 = vadd.f32 %v555_v16, %v553_v19 }
 0x219   : > { %v558_v22 = vmax.f32 %v556_v20, 0.0 }
 0x21a   : > { %v559_v23 = vmax.f32 %v557_v21, 0.0 }
 0x21b   : > { %v560_v24 = vsel %vm361_vm0, %v558_v22, 0.0 }
 0x21c   : > { %v561_v25 = vsel %vm361_vm0, %v559_v23, 0.0 }
 0x21d   : > { %v562_v26 = vadd.f32 %v561_v25, %v560_v24 }
 0x21f   : > { %563 = vadd.xlane.f32.xlu0 %v562_v26 }
 0x292   : > { %v564_v27 = vpop.xlane.xlu0 %563 }
 0x293   : > { %v565_v28 = vrot.slane %v564_v27, 4 }
 0x295   : > { %v566_v29 = vadd.f32 %v565_v28, %v564_v27 }
 0x297   : > { %v567_v30 = vrot.slane %v566_v29, 2 }
 0x299   : > { %v568_v31 = vadd.f32 %v567_v30, %v566_v29 }
 0x29b   : > { %v569_v32 = vrot.slane %v568_v31, 1 }
 0x29d   : > { %v570_v33 = vadd.f32 %v569_v32, %v568_v31 }
 0x29f   : > { %761 = vpush %v570_v33 }
 0x2d0   : > { %s762_s16 = spop %761 }
 0x2d1   : > { %v572_v34 = vstv %s762_s16 }
 0x2d2   : > { %573 = vst [vmem:[%s1316_s14] sm:$0xff] %v572_v34 }
 0x2d3 PF: > { %s751_s27 = sshll.u32 %s1039_s20, 3  ;;  %s587_s25 = sshll.u32 %s1316_s14, 4  ;;  %s588_s25 = int_to_ptr.vmem [resolvable:$true] %s587_s25 }
 0x2d4   : > { %s585_s26 = scalar_lea.hbm %s1387_s4, %s751_s27  ;;  %s575_s13 = scalar_lea.sflag [#allocation7], %s1293_s6 }
 0x2d5   : > { %s589_s10 = sshll.u32 %s585_s26, 4  ;;  %s981_s20 = scalar_lea.hbm %s1387_s4, 16  ;;  %s590_s10 = int_to_ptr.hbm [resolvable:$true] %s589_s10 }
 0x2d6   : > { %s975_s15 = sshra.s32 %s590_s10, 4  ;;  %s976_s15 = int_to_ptr.hbm [resolvable:$true] %s975_s15 }
 0x2d7   : > { %s977_s0 = scalar_lea.hbm %s976_s15, 8  ;;  %p982_p6 = scmp.lt.s32.totalorder %s976_s15, %s1387_s4 }
 0x2d8   : > { %p978_p2 = scmp.ne.s32.totalorder %s976_s15, %s977_s0  ;;  %p983_p7 = scmp.lt.s32.totalorder %s981_s20, %s977_s0 }
 0x2da   : > { %p979_p3 = pnand %p978_p2, %p1142_p9  ;;  %p984_p0 = por %p983_p7, %p982_p6 }
 0x2dc   : > { %p980_p5 = pneg %p979_p3 }
 0x2de   : > { %p985_p10 = pnand %p984_p0, %p980_p5 }
 0x2e0   : > { %988 = shalt.err (!%p985_p10)
}
 0x2e1   : > { %766 = dma.vmem_to_hbm [thread:$0]  (%p1142_p9), %s588_s25, 128, %s590_s10, %s575_s13  }
 0x2e2 PF: > { %s601_s6 = sand.u32 1, %s1027_s17   ;;  %p769_p13 = pnand %p720_p12, %p1149_p11 }
 0x2e3   : > { %s602_s14 = scalar_lea.sflag [#allocation7], %s601_s6 }
 0x2e4   : > { %p770_p1 = pneg %p769_p13 }
 0x2e6   : > { %1022 = dma.done.wait (%p770_p1), %s602_s14, 128  }
 0x2e7   : > { %1024 = vsyncadd (%p770_p1), %s602_s14, 4294967168  ;;  %s24_s22 = sadd.s32 1, %s1047_s22   ;;  %s1399_s17 = smov %s1031_s18 }
 0x2e8   : > { %p21_p8 = scmp.ge.s32.totalorder %s24_s22, 4   ;;  %s1400_s18 = smov %s1035_s19 }
 0x2e9   : > { %s1401_s19 = smov %s1147_s30  ;;  %s1402_s20 = smov %s1043_s21 }
 0x2ea   : > { %s1403_s21 = smov %s1405_s24  ;;  %23 = sbr.rel (!%p21_p8) target bundleno = 10 (0xa), region = 117 }
 0x2ef   :  { %608 = vsyncpa [#allocation6], 1 }
 0x2f0   :  { %610 = vsyncpa [#allocation6 + $0x1], 1 }
 0x2f1   :  { %611 = vsyncpa [#allocation9], 1 }
 0x2f2   :  { %613 = vsyncpa [#allocation9 + $0x1], 1 }
 0x2f3   :  { %614 = vsyncpa [#allocation7], 1 }
 0x2f4   :  { %616 = vsyncpa [#allocation7 + $0x1], 1 }

</bundles_post_ra>
